<compile_context>
chip_gen: v5e
topology: v5e:2x2
jax: 0.10.0
libtpu: 0.0.40
codegen_flags: <defaults>
</compile_context>

<pallas_src>
import functools

import jax
import jax.numpy as jnp
from jax.experimental import pallas as pl
from jax.experimental.pallas import tpu as pltpu


def _resblock_kernel(x_ref, w1s_ref, w2_ref, b1_ref, b2_ref, o_ref, *, h_img, wcout):
    """Fused ResBlock forward for a block of NB batch elements.

    x_ref   : (NB*H, W*Cin)             input rows (lane = w*Cin + c), f32
    w1s_ref : (3*W*Cin, 2*W*Cout) bf16  [conv1 bands | shortcut] fused weight
    w2_ref  : (3*W*Cout, W*Cout)  bf16  conv2 bands, K-fused
    b1_ref  : (1, W*Cout)               BN1 bias (scale folded into w1s)
    b2_ref  : (1, W*Cout)               BN2 bias + shortcut BN bias (pre-summed)
    o_ref   : (NB*H, W*Cout)            output rows, f32
    """
    x = x_ref[...]
    rows = x.shape[0]

    # Image-top / image-bottom row masks computed in-kernel (VPU ops in idle
    # slots) instead of being DMA'd in.
    h = jax.lax.broadcasted_iota(jnp.int32, (rows, 1), 0) % h_img
    not_top = h != 0
    not_bot = h != (h_img - 1)

    def taps(v):
        # Lane-concat [row h-1 | row h | row h+1]; rows that rolled across an
        # image/batch boundary are zeroed.  Rolls use the XLU (free slot);
        # the bf16 cast feeds the native MXU path (f32 accumulation below).
        up = jnp.where(not_top, pltpu.roll(v, 1, 0), 0.0)
        dn = jnp.where(not_bot, pltpu.roll(v, v.shape[0] - 1, 0), 0.0)
        return jnp.concatenate([up, v, dn], axis=1).astype(jnp.bfloat16)

    # conv1 (3 vertical taps K-fused) + 1x1 shortcut fused along output lanes:
    # one (rows, 3*W*Cin) x (3*W*Cin, 2*W*Cout) matmul, lane-128-aligned slices.
    r = jnp.dot(taps(x), w1s_ref[...], preferred_element_type=jnp.float32)
    y1 = jnp.maximum(r[:, :wcout] + b1_ref[...], 0.0)   # conv1 -> BN1 -> ReLU
    sc = r[:, wcout:]                                    # 1x1 conv -> BN (bias in b2)

    # conv2 (3 vertical taps K-fused): one (rows, 3*W*Cout) x (3*W*Cout, W*Cout) matmul
    y2 = jnp.dot(taps(y1), w2_ref[...], preferred_element_type=jnp.float32)

    # residual add (+ conv2/shortcut BN biases) + ReLU, lane-dense store
    o_ref[...] = jnp.maximum(y2 + sc + b2_ref[...], 0.0)


# ---------------- host-side parameter preparation ----------------

def _fold_bn(gamma, beta, mean, var, eps=1e-5):
    scale = gamma / jnp.sqrt(var + eps)
    bias = beta - mean * scale
    return scale, bias


def _band_weights(w_hwio, scale, W):
    """Fold per-Cout BN scale into a 3x3 HWIO weight and build, per vertical tap
    dy, a block-tridiagonal (W*I, W*O) matrix applying the three horizontal taps
    (and horizontal zero padding) as a single matmul."""
    w = w_hwio * scale                                  # (3, 3, I, O)
    _, _, i_ch, o_ch = w.shape
    bands = []
    for dy in range(3):
        m = sum(jnp.einsum("wv,io->wivo",
                           jnp.eye(W, W, k=1 - dx, dtype=w.dtype), w[dy, dx])
                for dx in range(3))
        bands.append(m.reshape(W * i_ch, W * o_ch))
    return jnp.stack(bands)                             # (3, W*I, W*O)


def _blockdiag_weight(w_io, scale, W):
    w = w_io * scale                                    # (I, O)
    i_ch, o_ch = w.shape
    return jnp.einsum("wv,io->wivo",
                      jnp.eye(W, dtype=w.dtype), w).reshape(W * i_ch, W * o_ch)


def _pick_nb(n, h, row_cap=1024):
    """Batch elements per grid step: as many rows as the cap allows, but prefer
    >= 2 grid steps so both v7x TensorCores get work (1-TC v5e/v6e only pay one
    extra ~0.35us step for that)."""
    best = 1
    for cand in range(min(n, max(1, row_cap // h)), 0, -1):
        if n % cand == 0:
            if best == 1:
                best = cand
            if n // cand >= 2:
                return cand
    return best


@jax.jit
def resblock_pallas(x_nchw, params):
    N, Cin, H, W = x_nchw.shape
    Cout = params["w1"].shape[-1]
    WCin, WCout = W * Cin, W * Cout

    NB = _pick_nb(N, H)
    NBH = NB * H

    # NCHW -> (N*H, W*Cin) rows (lane = w*Cin + c).
    # TODO(synk): at scale, accept/return NHWC to avoid these host-side
    # transposes (extra HBM round trips outside the kernel); noise at this size.
    x_rows = jnp.transpose(x_nchw, (0, 2, 3, 1)).reshape(N * H, WCin)

    # Fold eval-mode BN scales into the conv weights; pre-sum biases.
    s1, b1 = _fold_bn(*params["bn1"])
    s2, b2 = _fold_bn(*params["bn2"])
    ss, bs = _fold_bn(*params["bns"])

    band1 = _band_weights(params["w1"], s1, W).reshape(3 * WCin, WCout)
    band2 = _band_weights(params["w2"], s2, W).reshape(3 * WCout, WCout)
    wsd = _blockdiag_weight(params["ws"][0, 0], ss, W)          # (WCin, WCout)

    # Fuse the 1x1 shortcut with conv1 along output lanes: the shortcut only
    # reads the un-rolled (center-tap) rows, so it occupies the middle WCin
    # block of the K axis.  Output width 2*WCout = 256 fills a full MXU tile
    # on v6e/v7x and removes one matmul issue.
    ws_pad = jnp.zeros((3 * WCin, WCout), jnp.float32).at[WCin:2 * WCin].set(wsd)
    w1s = jnp.concatenate([band1, ws_pad], axis=1).astype(jnp.bfloat16)  # (3*WCin, 2*WCout)
    w2f = band2.astype(jnp.bfloat16)                                     # (3*WCout, WCout)

    bias1 = jnp.tile(b1, W).reshape(1, WCout)
    bias2 = jnp.tile(b2 + bs, W).reshape(1, WCout)       # conv2 BN + shortcut BN biases

    kernel = functools.partial(_resblock_kernel, h_img=H, wcout=WCout)

    out_rows = pl.pallas_call(
        kernel,
        out_shape=jax.ShapeDtypeStruct((N * H, WCout), jnp.float32),
        grid_spec=pltpu.PrefetchScalarGridSpec(
            num_scalar_prefetch=0,
            grid=(N // NB,),
            in_specs=[
                pl.BlockSpec((NBH, WCin), lambda i: (i, 0)),
                # grid-invariant weights / biases (always block 0); see NOTE at
                # top about single-buffering them when W*C grows.
                pl.BlockSpec((3 * WCin, 2 * WCout), lambda i: (0, 0)),
                pl.BlockSpec((3 * WCout, WCout), lambda i: (0, 0)),
                pl.BlockSpec((1, WCout), lambda i: (0, 0)),
                pl.BlockSpec((1, WCout), lambda i: (0, 0)),
            ],
            out_specs=pl.BlockSpec((NBH, WCout), lambda i: (i, 0)),
        ),
        compiler_params=pltpu.CompilerParams(
            dimension_semantics=("parallel",)),
    )(x_rows, w1s, w2f, bias1, bias2)

    out = out_rows.reshape(N, H, W, Cout)
    return jnp.transpose(out, (0, 3, 1, 2))              # back to NCHW


# ------------- deterministic parameter init + pure-JAX reference -------------

def make_params(key, cin, cout):
    ks = jax.random.split(key, 6)

    def bn_params(k):
        k1, k2, k3, k4 = jax.random.split(k, 4)
        gamma = 1.0 + 0.1 * jax.random.normal(k1, (cout,), jnp.float32)
        beta = 0.1 * jax.random.normal(k2, (cout,), jnp.float32)
        mean = 0.1 * jax.random.normal(k3, (cout,), jnp.float32)
        var = 1.0 + 0.1 * jnp.abs(jax.random.normal(k4, (cout,), jnp.float32))
        return (gamma, beta, mean, var)

    return {
        "w1": 0.2 * jax.random.normal(ks[0], (3, 3, cin, cout), jnp.float32),   # HWIO
        "w2": 0.2 * jax.random.normal(ks[1], (3, 3, cout, cout), jnp.float32),
        "ws": 0.2 * jax.random.normal(ks[2], (1, 1, cin, cout), jnp.float32),
        "bn1": bn_params(ks[3]),
        "bn2": bn_params(ks[4]),
        "bns": bn_params(ks[5]),
    }


def resblock_reference(x_nchw, params, eps=1e-5):
    x = jnp.transpose(x_nchw, (0, 2, 3, 1))  # NHWC

    def conv(v, w, pad=1):
        return jax.lax.conv_general_dilated(
            v, w, (1, 1), ((pad, pad), (pad, pad)),
            dimension_numbers=("NHWC", "HWIO", "NHWC"),
            precision=jax.lax.Precision.HIGHEST)

    def bn(v, p):
        gamma, beta, mean, var = p
        return (v - mean) / jnp.sqrt(var + eps) * gamma + beta

    left = jnp.maximum(bn(conv(x, params["w1"]), params["bn1"]), 0.0)
    left = bn(conv(left, params["w2"]), params["bn2"])
    short = bn(conv(x, params["ws"], pad=0), params["bns"])
    out = jnp.maximum(left + short, 0.0)
    return jnp.transpose(out, (0, 3, 1, 2))  # NCHW


if __name__ == "__main__":
    key = jax.random.PRNGKey(0)
    kx, kp = jax.random.split(key)

    N, Cin, Cout, H, W = 2, 4, 8, 16, 16          # ResBlock(4, 8, stride=1)
    x = jax.random.normal(kx, (N, Cin, H, W), jnp.float32)
    params = make_params(kp, Cin, Cout)

    out = jax.block_until_ready(resblock_pallas(x, params))
    ref = jax.block_until_ready(resblock_reference(x, params))

    assert out.shape == (N, Cout, H, W), out.shape
    # Kernel uses bf16 weights/activations on the MXU (f32 accumulation), so the
    # tolerance vs the f32 HIGHEST-precision reference is loosened from 1e-3.
    if not jnp.allclose(out, ref, atol=5e-2, rtol=5e-2):
        err = float(jnp.max(jnp.abs(out - ref)))
        raise AssertionError(
            f"Pallas ResBlock output mismatch vs JAX reference (max abs err {err})")
    print("KERNEL_OK")
</pallas_src>

<mosaic_0001>
module attributes {stable_mosaic.version = 11 : i64} {
  func.func @_resblock_kernel(%arg0: i32, %arg1: memref<16x64xf32, #tpu.memory_space<vmem>>, %arg2: memref<192x256xbf16, #tpu.memory_space<vmem>>, %arg3: memref<384x128xbf16, #tpu.memory_space<vmem>>, %arg4: memref<1x128xf32, #tpu.memory_space<vmem>>, %arg5: memref<1x128xf32, #tpu.memory_space<vmem>>, %arg6: memref<16x128xf32, #tpu.memory_space<vmem>>) attributes {dimension_semantics = [#tpu.dimension_semantics<parallel>], iteration_bounds = array<i64: 2>, scalar_prefetch = 0 : i64, scratch_operands = 0 : i64, tpu.core_type = #tpu.core_type<tc>, window_params = [{transform_indices = @transform_0, window_bounds = array<i64: 16, 64>}, {pipeline_mode = #tpu.pipeline_mode<synchronous>, transform_indices = @transform_1, window_bounds = array<i64: 192, 256>}, {pipeline_mode = #tpu.pipeline_mode<synchronous>, transform_indices = @transform_2, window_bounds = array<i64: 384, 128>}, {pipeline_mode = #tpu.pipeline_mode<synchronous>, transform_indices = @transform_3, window_bounds = array<i64: 1, 128>}, {pipeline_mode = #tpu.pipeline_mode<synchronous>, transform_indices = @transform_4, window_bounds = array<i64: 1, 128>}, {transform_indices = @transform_5, window_bounds = array<i64: 16, 128>}]} {
    %c0 = arith.constant 0 : index
    %c0_0 = arith.constant 0 : index
    %0 = vector.load %arg1[%c0, %c0_0] : memref<16x64xf32, #tpu.memory_space<vmem>>, vector<16x64xf32>
    %1 = tpu.iota {dimensions = array<i32: 0>} : vector<16x1xi32>
    %c16_i32 = arith.constant 16 : i32
    %c0_i32 = arith.constant 0 : i32
    %2 = arith.cmpi eq, %c16_i32, %c0_i32 : i32
    %c1_i32 = arith.constant 1 : i32
    %3 = arith.select %2, %c1_i32, %c16_i32 : i32
    %4 = vector.broadcast %3 : i32 to vector<16x1xi32>
    %5 = arith.remsi %1, %4 : vector<16x1xi32>
    %c0_i32_1 = arith.constant 0 : i32
    %6 = vector.broadcast %c0_i32_1 : i32 to vector<16x1xi32>
    %7 = arith.cmpi ne, %5, %6 : vector<16x1xi32>
    %c0_i32_2 = arith.constant 0 : i32
    %8 = vector.broadcast %c0_i32_2 : i32 to vector<16x1xi32>
    %9 = arith.cmpi slt, %5, %8 : vector<16x1xi32>
    %c0_i32_3 = arith.constant 0 : i32
    %10 = arith.cmpi slt, %3, %c0_i32_3 : i32
    %11 = vector.broadcast %10 : i1 to vector<16x1xi1>
    %12 = vector.broadcast %11 : vector<16x1xi1> to vector<16x1xi1>
    %13 = arith.xori %9, %12 : vector<16x1xi1>
    %14 = arith.andi %13, %7 : vector<16x1xi1>
    %15 = vector.broadcast %3 : i32 to vector<16x1xi32>
    %16 = arith.addi %5, %15 : vector<16x1xi32>
    %17 = arith.select %14, %16, %5 : vector<16x1xi1>, vector<16x1xi32>
    %c0_i32_4 = arith.constant 0 : i32
    %18 = vector.broadcast %c0_i32_4 : i32 to vector<16x1xi32>
    %19 = arith.cmpi ne, %17, %18 : vector<16x1xi32>
    %c15_i32 = arith.constant 15 : i32
    %20 = vector.broadcast %c15_i32 : i32 to vector<16x1xi32>
    %21 = arith.cmpi ne, %17, %20 : vector<16x1xi32>
    %c1_i32_5 = arith.constant 1 : i32
    %22 = tpu.dynamic_rotate %0 by %c1_i32_5 dim 0 : vector<16x64xf32>, i32 -> vector<16x64xf32>
    %cst = arith.constant 0.000000e+00 : f32
    %23 = vector.shape_cast %19 : vector<16x1xi1> to vector<16x1xi1>
    %24 = vector.broadcast %23 : vector<16x1xi1> to vector<16x64xi1>
    %25 = vector.broadcast %cst : f32 to vector<16x64xf32>
    %26 = arith.select %24, %22, %25 : vector<16x64xi1>, vector<16x64xf32>
    %c15_i32_6 = arith.constant 15 : i32
    %27 = tpu.dynamic_rotate %0 by %c15_i32_6 dim 0 : vector<16x64xf32>, i32 -> vector<16x64xf32>
    %cst_7 = arith.constant 0.000000e+00 : f32
    %28 = vector.shape_cast %21 : vector<16x1xi1> to vector<16x1xi1>
    %29 = vector.broadcast %28 : vector<16x1xi1> to vector<16x64xi1>
    %30 = vector.broadcast %cst_7 : f32 to vector<16x64xf32>
    %31 = arith.select %29, %27, %30 : vector<16x64xi1>, vector<16x64xf32>
    %32 = tpu.concatenate %26, %0, %31 in 1 : vector<16x64xf32>, vector<16x64xf32>, vector<16x64xf32> -> vector<16x192xf32>
    %33 = arith.truncf %32 : vector<16x192xf32> to vector<16x192xbf16>
    %c0_8 = arith.constant 0 : index
    %c0_9 = arith.constant 0 : index
    %34 = vector.load %arg2[%c0_8, %c0_9] : memref<192x256xbf16, #tpu.memory_space<vmem>>, vector<192x256xbf16>
    %cst_10 = arith.constant dense<0.000000e+00> : vector<16x256xf32>
    %35 = tpu.matmul %33, %34, %cst_10 {dimension_numbers = #tpu.dot_dimension_numbers<[1], [0], [0], [1], [0, 0, 1, 1], [], []>} : vector<16x192xbf16>, vector<192x256xbf16>, vector<16x256xf32> -> vector<16x256xf32>
    %36 = vector.extract_strided_slice %35 {offsets = [0, 0], sizes = [16, 128], strides = [1, 1]} : vector<16x256xf32> to vector<16x128xf32>
    %c0_11 = arith.constant 0 : index
    %c0_12 = arith.constant 0 : index
    %37 = vector.load %arg4[%c0_11, %c0_12] : memref<1x128xf32, #tpu.memory_space<vmem>>, vector<1x128xf32>
    %38 = vector.broadcast %37 : vector<1x128xf32> to vector<16x128xf32>
    %39 = arith.addf %36, %38 : vector<16x128xf32>
    %cst_13 = arith.constant 0.000000e+00 : f32
    %40 = vector.broadcast %cst_13 : f32 to vector<16x128xf32>
    %41 = arith.maximumf %39, %40 : vector<16x128xf32>
    %42 = vector.extract_strided_slice %35 {offsets = [0, 128], sizes = [16, 128], strides = [1, 1]} : vector<16x256xf32> to vector<16x128xf32>
    %c1_i32_14 = arith.constant 1 : i32
    %43 = tpu.dynamic_rotate %41 by %c1_i32_14 dim 0 : vector<16x128xf32>, i32 -> vector<16x128xf32>
    %cst_15 = arith.constant 0.000000e+00 : f32
    %44 = vector.shape_cast %19 : vector<16x1xi1> to vector<16x1xi1>
    %45 = vector.broadcast %44 : vector<16x1xi1> to vector<16x128xi1>
    %46 = vector.broadcast %cst_15 : f32 to vector<16x128xf32>
    %47 = arith.select %45, %43, %46 : vector<16x128xi1>, vector<16x128xf32>
    %c15_i32_16 = arith.constant 15 : i32
    %48 = tpu.dynamic_rotate %41 by %c15_i32_16 dim 0 : vector<16x128xf32>, i32 -> vector<16x128xf32>
    %cst_17 = arith.constant 0.000000e+00 : f32
    %49 = vector.shape_cast %21 : vector<16x1xi1> to vector<16x1xi1>
    %50 = vector.broadcast %49 : vector<16x1xi1> to vector<16x128xi1>
    %51 = vector.broadcast %cst_17 : f32 to vector<16x128xf32>
    %52 = arith.select %50, %48, %51 : vector<16x128xi1>, vector<16x128xf32>
    %53 = tpu.concatenate %47, %41, %52 in 1 : vector<16x128xf32>, vector<16x128xf32>, vector<16x128xf32> -> vector<16x384xf32>
    %54 = arith.truncf %53 : vector<16x384xf32> to vector<16x384xbf16>
    %c0_18 = arith.constant 0 : index
    %c0_19 = arith.constant 0 : index
    %55 = vector.load %arg3[%c0_18, %c0_19] : memref<384x128xbf16, #tpu.memory_space<vmem>>, vector<384x128xbf16>
    %cst_20 = arith.constant dense<0.000000e+00> : vector<16x128xf32>
    %56 = tpu.matmul %54, %55, %cst_20 {dimension_numbers = #tpu.dot_dimension_numbers<[1], [0], [0], [1], [0, 0, 1, 1], [], []>} : vector<16x384xbf16>, vector<384x128xbf16>, vector<16x128xf32> -> vector<16x128xf32>
    %57 = arith.addf %56, %42 : vector<16x128xf32>
    %c0_21 = arith.constant 0 : index
    %c0_22 = arith.constant 0 : index
    %58 = vector.load %arg5[%c0_21, %c0_22] : memref<1x128xf32, #tpu.memory_space<vmem>>, vector<1x128xf32>
    %59 = vector.broadcast %58 : vector<1x128xf32> to vector<16x128xf32>
    %60 = arith.addf %57, %59 : vector<16x128xf32>
    %cst_23 = arith.constant 0.000000e+00 : f32
    %61 = vector.broadcast %cst_23 : f32 to vector<16x128xf32>
    %62 = arith.maximumf %60, %61 : vector<16x128xf32>
    %c0_24 = arith.constant 0 : index
    %c0_25 = arith.constant 0 : index
    %63 = vector.load %arg6[%c0_24, %c0_25] : memref<16x128xf32, #tpu.memory_space<vmem>>, vector<16x128xf32>
    tpu.vector_store %arg6[%c0_24, %c0_25], %62 {strides = array<i32>} : memref<16x128xf32, #tpu.memory_space<vmem>>, vector<16x128xf32>,
    return
  }
  func.func @transform_0(%arg0: i32) -> (i32, i32) {
    %c0_i32 = arith.constant 0 : i32
    %c0_i32_0 = arith.constant 0 : i32
    return %arg0, %c0_i32 : i32, i32
  }
  func.func @transform_1(%arg0: i32) -> (i32, i32) {
    %c0_i32 = arith.constant 0 : i32
    %c0_i32_0 = arith.constant 0 : i32
    %c0_i32_1 = arith.constant 0 : i32
    return %c0_i32, %c0_i32_0 : i32, i32
  }
  func.func @transform_2(%arg0: i32) -> (i32, i32) {
    %c0_i32 = arith.constant 0 : i32
    %c0_i32_0 = arith.constant 0 : i32
    %c0_i32_1 = arith.constant 0 : i32
    return %c0_i32, %c0_i32_0 : i32, i32
  }
  func.func @transform_3(%arg0: i32) -> (i32, i32) {
    %c0_i32 = arith.constant 0 : i32
    %c0_i32_0 = arith.constant 0 : i32
    %c0_i32_1 = arith.constant 0 : i32
    return %c0_i32, %c0_i32_0 : i32, i32
  }
  func.func @transform_4(%arg0: i32) -> (i32, i32) {
    %c0_i32 = arith.constant 0 : i32
    %c0_i32_0 = arith.constant 0 : i32
    %c0_i32_1 = arith.constant 0 : i32
    return %c0_i32, %c0_i32_0 : i32, i32
  }
  func.func @transform_5(%arg0: i32) -> (i32, i32) {
    %c0_i32 = arith.constant 0 : i32
    %c0_i32_0 = arith.constant 0 : i32
    return %arg0, %c0_i32 : i32, i32
  }
}

</mosaic_0001>

<bundles_post_ra>
// kernel: tile.18
= control target key start
LH: loop header
LB: loop body
LE: loop exit
PB: predicated region body
PF: predicated region fallthrough
CT: control target
= control target key end

     0   :  { %s28_s0 = inlined_call_operand.vmem [shape: f32[8], index: 0, kind: input, shape index: {}]   ;;  %s29_s1 = inlined_call_operand.vmem [shape: f32[16,8], index: 1, kind: output, shape index: {}]  }
   0x1   :  { %v4_v0 = vld [vmem:[%s28_s0] ss:$0 sm:$0xff] }
   0x2   :  { %5 = vst [vmem:[%s29_s1] sm:$0xff] %v4_v0 }
   0x3   :  { %8 = vst [vmem:[%s29_s1 + $0x8] sm:$0xff] %v4_v0 }

// kernel: tile.19
= control target key start
LH: loop header
LB: loop body
LE: loop exit
PB: predicated region body
PF: predicated region fallthrough
CT: control target
= control target key end

     0   :  { %s131_s10 = smov 120   ;;  %s132_s11 = smov 104   ;;  %vm3_vm0 = vcmask 64512   ;;  %vm9_vm1 = vcmask 1048512   ;;  %vm15_vm2 = vcmask 982912   ;;  %vm21_vm3 = vcmask 917312   ;;  %s207_s0 = inlined_call_operand.vmem [shape: f32[16,8], index: 0, kind: input, shape index: {}]   ;;  %s208_s1 = inlined_call_operand.vmem [shape: f32[1,128], index: 1, kind: output, shape index: {}]  }
   0x1   :  { %v101_v0 = vld [vmem:[%s207_s0 + $0xf] sm:$0x1]   ;;  %v103_v1 = vld [vmem:[%s207_s0 + $0xd] sm:$0x1]   ;;  %v105_v2 = vld [vmem:[%s207_s0 + $0xb] sm:$0x1]  }
   0x2   :  { %7 = vrot.lane.b32.xlu0 %v101_v0, %s131_s10  ;;  %19 = vrot.lane.b32.xlu1 %v103_v1, %s132_s11  ;;  %s133_s14 = smov 88   ;;  %v102_v3 = vld [vmem:[%s207_s0 + $0xe] sm:$0x1]   ;;  %v104_v4 = vld [vmem:[%s207_s0 + $0xc] sm:$0x1]   ;;  %s134_s19 = smov 112  }
   0x3   :  { %31 = vrot.lane.b32.xlu2 %v105_v2, %s133_s14  ;;  %s135_s20 = smov 96   ;;  %v106_v5 = vld [vmem:[%s207_s0 + $0xa] sm:$0x1]   ;;  %s136_s23 = smov 80   ;;  %v107_v6 = vld [vmem:[%s207_s0 + $0x9] sm:$0x1]  }
   0x4   :  { %v108_v7 = vld [vmem:[%s207_s0 + $0x8] sm:$0x1]   ;;  %s137_s28 = smov 72   ;;  %s138_s29 = smov 64   ;;  %v109_v8 = vld [vmem:[%s207_s0 + $0x7] sm:$0x1]  }
   0x5   :  { %s139_s3 = smov 56   ;;  %v110_v9 = vld [vmem:[%s207_s0 + $0x6] sm:$0x1]   ;;  %v111_v10 = vld [vmem:[%s207_s0 + $0x5] sm:$0x1]   ;;  %s140_s8 = smov 48  }
   0x6   :  { %s141_s9 = smov 40   ;;  %v112_v11 = vld [vmem:[%s207_s0 + $0x4] sm:$0x1]   ;;  %s142_s12 = smov 32   ;;  %v113_v12 = vld [vmem:[%s207_s0 + $0x3] sm:$0x1]  }
   0x7   :  { %v114_v13 = vld [vmem:[%s207_s0 + $0x2] sm:$0x1]   ;;  %s143_s17 = smov 24   ;;  %s144_s18 = smov 16   ;;  %v115_v14 = vld [vmem:[%s207_s0 + $0x1] sm:$0x1]  }
   0x8   :  { %s145_s21 = smov 8   ;;  %v2_v15 = vld [vmem:[%s207_s0] sm:$0x1]   ;;  %vm27_vm4 = vcmask 851712   ;;  %vm33_vm5 = vcmask 786112   ;;  %vm39_vm6 = vcmask 720512  }
   0x9   :  { %4 = vst.msk [vmem:[#allocation0] sm:$0x1] %vm3_vm0, %v2_v15   ;;  %vm45_vm7 = vcmask 654912   ;;  %vm51_vm8 = vcmask 589312   ;;  %vm57_vm9 = vcmask 523712   ;;  %vm63_vm10 = vcmask 458112  }
   0xa   :  { %13 = vrot.lane.b32.xlu0 %v102_v3, %s134_s19  ;;  %25 = vrot.lane.b32.xlu1 %v104_v4, %s135_s20  ;;  %vm69_vm11 = vcmask 392512   ;;  %vm75_vm12 = vcmask 326912   ;;  %vm81_vm13 = vcmask 261312   ;;  %vm87_vm14 = vcmask 195712  }
   0xb   :  { %37 = vrot.lane.b32.xlu2 %v106_v5, %s136_s23  ;;  %vm93_vm15 = vcmask 130112  }
  0x12   :  { %43 = vrot.lane.b32.xlu0 %v107_v6, %s137_s28  ;;  %49 = vrot.lane.b32.xlu1 %v108_v7, %s138_s29 }
  0x13   :  { %55 = vrot.lane.b32.xlu2 %v109_v8, %s139_s3 }
  0x1a   :  { %61 = vrot.lane.b32.xlu0 %v110_v9, %s140_s8  ;;  %67 = vrot.lane.b32.xlu1 %v111_v10, %s141_s9 }
  0x1b   :  { %73 = vrot.lane.b32.xlu2 %v112_v11, %s142_s12 }
  0x22   :  { %79 = vrot.lane.b32.xlu0 %v113_v12, %s143_s17  ;;  %85 = vrot.lane.b32.xlu1 %v114_v13, %s144_s18 }
  0x23   :  { %91 = vrot.lane.b32.xlu2 %v115_v14, %s145_s21 }
  0x5d   :  { %v32_v16 = vpop.permute.xlu2 %31  }
  0x65   :  { %v38_v17 = vpop.permute.xlu2 %37  }
  0x6d   :  { %v56_v18 = vpop.permute.xlu2 %55  }
  0x74   :  { %v8_v19 = vpop.permute.xlu0 %7   ;;  %v20_v20 = vpop.permute.xlu1 %19  }
  0x75   :  { %10 = vst.msk [vmem:[#allocation0] sm:$0x1] %vm9_vm1, %v8_v19   ;;  %v74_v21 = vpop.permute.xlu2 %73  }
  0x7c   :  { %v14_v22 = vpop.permute.xlu0 %13   ;;  %v26_v23 = vpop.permute.xlu1 %25  }
  0x7d   :  { %16 = vst.msk [vmem:[#allocation0] sm:$0x1] %vm15_vm2, %v14_v22   ;;  %v92_v24 = vpop.permute.xlu2 %91  }
  0x7e   :  { %22 = vst.msk [vmem:[#allocation0] sm:$0x1] %vm21_vm3, %v20_v20  }
  0x7f   :  { %28 = vst.msk [vmem:[#allocation0] sm:$0x1] %vm27_vm4, %v26_v23  }
  0x80   :  { %34 = vst.msk [vmem:[#allocation0] sm:$0x1] %vm33_vm5, %v32_v16  }
  0x81   :  { %40 = vst.msk [vmem:[#allocation0] sm:$0x1] %vm39_vm6, %v38_v17  }
  0x84   :  { %v44_v25 = vpop.permute.xlu0 %43   ;;  %v50_v26 = vpop.permute.xlu1 %49  }
  0x85   :  { %46 = vst.msk [vmem:[#allocation0] sm:$0x1] %vm45_vm7, %v44_v25  }
  0x86   :  { %52 = vst.msk [vmem:[#allocation0] sm:$0x1] %vm51_vm8, %v50_v26  }
  0x87   :  { %58 = vst.msk [vmem:[#allocation0] sm:$0x1] %vm57_vm9, %v56_v18  }
  0x8c   :  { %v62_v27 = vpop.permute.xlu0 %61   ;;  %v68_v28 = vpop.permute.xlu1 %67  }
  0x8d   :  { %64 = vst.msk [vmem:[#allocation0] sm:$0x1] %vm63_vm10, %v62_v27  }
  0x8e   :  { %70 = vst.msk [vmem:[#allocation0] sm:$0x1] %vm69_vm11, %v68_v28  }
  0x8f   :  { %76 = vst.msk [vmem:[#allocation0] sm:$0x1] %vm75_vm12, %v74_v21  }
  0x94   :  { %v80_v29 = vpop.permute.xlu0 %79   ;;  %v86_v30 = vpop.permute.xlu1 %85  }
  0x95   :  { %82 = vst.msk [vmem:[#allocation0] sm:$0x1] %vm81_vm13, %v80_v29  }
  0x96   :  { %88 = vst.msk [vmem:[#allocation0] sm:$0x1] %vm87_vm14, %v86_v30  }
  0x97   :  { %94 = vst.msk [vmem:[#allocation0] sm:$0x1] %vm93_vm15, %v92_v24  }
  0x9e   :  { %v97_v31 = vld [vmem:[#allocation0] sm:$0x1] }
  0x9f   :  { %100 = vst [vmem:[%s208_s1] sm:$0x1] %v97_v31 }

// kernel: resblock_pallas.1
= control target key start
LH: loop header
LB: loop body
LE: loop exit
PB: predicated region body
PF: predicated region fallthrough
CT: control target
= control target key end

     0   :  { %s1139_s18 = smov 0   ;;  %s1437_s0 = inlined_call_operand.vmem [shape: f32[32,64], index: 0, kind: input, shape index: {}]   ;;  %s1438_s1 = inlined_call_operand.vmem [shape: bf16[192,256], index: 1, kind: input, shape index: {}]   ;;  %s1439_s2 = inlined_call_operand.vmem [shape: bf16[384,128], index: 2, kind: input, shape index: {}]   ;;  %s1440_s3 = inlined_call_operand.vmem [shape: f32[1,128], index: 3, kind: input, shape index: {}]   ;;  %s1441_s4 = inlined_call_operand.vmem [shape: f32[1,128], index: 4, kind: input, shape index: {}]   ;;  %s1442_s5 = inlined_call_operand.vmem [shape: f32[32,128], index: 5, kind: output, shape index: {}]  }
   0x1 LB: > { %s823_s19 = sadd.s32 4294967295, %s1105_s18   ;;  %p827_p0 = scmp.ge.s32.totalorder %s1105_s18, 1  ;;  %s1105_s18 = sphi %s1139_s18, %s15_s18  }
   0x2   : > { %p188_p1 = scmp.lt.s32.totalorder %s1105_s18, 3 }
   0x4   : > { %p189_p2 = pnand %p827_p0, %p188_p1 }
   0x5   : > { %s828_s20 = sshll.u32 (!%p189_p2), %s823_s19, 1  ;;  %s1107_s17 = smov (!%p189_p2), 64  }
   0x6   : > { %192 = sbr.rel (%p189_p2) target bundleno = 431 (0x1af), region = 40  ;;  %p217_p3 = scmp.lt.s32.totalorder (!%p189_p2), %s828_s20, 3 }
   0xb   : > { %v890_v0 = vld [vmem:[%s1438_s1 + $0x70] sm:$0xf]  ;;  %v1049_v1 = vld [vmem:[%s1438_s1 + $0x74] sm:$0xf0]  ;;  %v231_v2 = vlaneseq  ;;  %v1048_v4 = vld [vmem:[%s1438_s1 + $0x74] sm:$0xf] }
   0xc   : > { %v891_v3 = vor.u32 %v1049_v1, %v890_v0  ;;  %v892_v5 = vld [vmem:[%s1438_s1 + $0x78] sm:$0xf0]  ;;  %v882_v7 = vld [vmem:[%s1438_s1 + $0x60] sm:$0xf]  ;;  %v1047_v8 = vld [vmem:[%s1438_s1 + $0x64] sm:$0xf0] }
   0xd   : > { %v895_v6 = vor.u32 %v1048_v4, %v892_v5  ;;  %v1046_v9 = vld [vmem:[%s1438_s1 + $0x64] sm:$0xf]  ;;  %s1448_s20 = smov (!%p217_p3, %s828_s20), 3  ;;  %v883_v10 = vor.u32 %v1047_v8, %v882_v7  ;;  %v884_v11 = vld [vmem:[%s1438_s1 + $0x68] sm:$0xf0]  ;;  %v1176_v13 = vshrl.u32 %v231_v2, 7 }
   0xe   : > { %444 = vmatpush.bf16.msra.mxu0 %v891_v3  ;;  %v874_v12 = vld [vmem:[%s1438_s1 + $0x50] sm:$0xf]  ;;  %v887_v14 = vor.u32 %v1046_v9, %v884_v11  ;;  %v1045_v15 = vld [vmem:[%s1438_s1 + $0x54] sm:$0xf0]  ;;  %s829_s22 = sshll.u32 %s1448_s20, 3  ;;  %vm292_vm2 = vcmask 523264  }
   0xf   : > { %472 = vmatpush.bf16.msra.mxu2 %v895_v6  ;;  %v922_v16 = vld [vmem:[%s1438_s1 + $0xb0] sm:$0xf]  ;;  %v1057_v17 = vld [vmem:[%s1438_s1 + $0xb4] sm:$0xf0]  ;;  %v1044_v19 = vld [vmem:[%s1438_s1 + $0x54] sm:$0xf]  ;;  %s220_s29 = scalar_lea.vmem %s1437_s0, %s829_s22  ;;  %v875_v25 = vor.u32 %v1045_v15, %v874_v12  ;;  %s226_s19 = scalar_lea.vmem %s1442_s5, %s829_s22 }
  0x10   : > { %v923_v18 = vor.u32 %v1057_v17, %v922_v16  ;;  %v876_v20 = vld [vmem:[%s1438_s1 + $0x58] sm:$0xf0]  ;;  %v233_v21 = vadd.s32 8, %v1176_v13  ;;  %v914_v22 = vld [vmem:[%s1438_s1 + $0xa0] sm:$0xf]  ;;  %v1205_v24 = vld [vmem:[%s220_s29 + $0x8] sm:$0xff] }
  0x11   : > { %v1203_v23 = vld [vmem:[%s220_s29] sm:$0xff]  ;;  %v1055_v26 = vld [vmem:[%s1438_s1 + $0xa4] sm:$0xf0]  ;;  %v274_v28 = vrot.slane %v1205_v24, 1  ;;  %v879_v30 = vor.u32 %v1044_v19, %v876_v20  ;;  %v868_v36 = vld [vmem:[%s1438_s1 + $0x48] sm:$0xf0] }
  0x12   : > { %445 = vmatpush.bf16.msra.mxu0 %v883_v10  ;;  %462 = vmatpush.bf16.msra.mxu1 %v923_v18  ;;  %v245_v27 = vand.u32 15, %v233_v21  ;;  %v1092_v29 = vpack.i.bf16 %v1205_v24, %v1203_v23  ;;  %v866_v31 = vld [vmem:[%s1438_s1 + $0x40] sm:$0xf]  ;;  %v1043_v32 = vld [vmem:[%s1438_s1 + $0x44] sm:$0xf0]  ;;  %v273_v33 = vrot.slane %v1203_v23, 1  ;;  %v915_v34 = vor.u32 %v1055_v26, %v914_v22 }
  0x13   : > { %473 = vmatpush.bf16.msra.mxu2 %v887_v14  ;;  %v1042_v35 = vld [vmem:[%s1438_s1 + $0x44] sm:$0xf]  ;;  %vm275_vm0 = vcmp.lt.s32.totalorder %v1176_v13, 7  ;;  %v906_v37 = vld [vmem:[%s1438_s1 + $0x90] sm:$0xf]  ;;  %v867_v39 = vor.u32 %v1043_v32, %v866_v31  ;;  %v263_v14 = vrot.slane %v1205_v24, 7 }
  0x14   : > { %1093 = vrot.lane.b32.xlu0 %v1092_v29, %s1107_s17  ;;  %v1053_v38 = vld [vmem:[%s1438_s1 + $0x94] sm:$0xf0]  ;;  %v858_v40 = vld [vmem:[%s1438_s1 + $0x30] sm:$0xf]  ;;  %v1056_v42 = vld [vmem:[%s1438_s1 + $0xb4] sm:$0xf]  ;;  %v871_v44 = vor.u32 %v1042_v35, %v868_v36  ;;  %v277_v48 = vsel %vm275_vm0, %v274_v28, %v273_v33  ;;  %v276_v59 = vsel %vm275_vm0, %v273_v33, %v274_v28 }
  0x15   : > { %v907_v41 = vor.u32 %v1053_v38, %v906_v37  ;;  %vm1239_vm1 = vcmp.ne.s32.totalorder %v245_v27, 15  ;;  %v1041_v45 = vld [vmem:[%s1438_s1 + $0x34] sm:$0xf0]  ;;  %v1040_v46 = vld [vmem:[%s1438_s1 + $0x34] sm:$0xf]  ;;  %v262_v15 = vrot.slane %v1203_v23, 7 }
  0x16   : > { %446 = vmatpush.bf16.msra.mxu0 %v875_v25  ;;  %463 = vmatpush.bf16.msra.mxu1 %v915_v34  ;;  %v924_v47 = vld [vmem:[%s1438_s1 + $0xb8] sm:$0xf0]  ;;  %v898_v51 = vld [vmem:[%s1438_s1 + $0x80] sm:$0xf]  ;;  %v1051_v52 = vld [vmem:[%s1438_s1 + $0x84] sm:$0xf0]  ;;  %v859_v55 = vor.u32 %v1041_v45, %v858_v40 }
  0x17   : > { %474 = vmatpush.bf16.msra.mxu2 %v879_v30  ;;  %v860_v49 = vld [vmem:[%s1438_s1 + $0x38] sm:$0xf0]  ;;  %v927_v50 = vor.u32 %v1056_v42, %v924_v47  ;;  %v1054_v53 = vld [vmem:[%s1438_s1 + $0xa4] sm:$0xf]  ;;  %v916_v54 = vld [vmem:[%s1438_s1 + $0xa8] sm:$0xf0]  ;;  %v899_v58 = vor.u32 %v1051_v52, %v898_v51 }
  0x18   : > { %v850_v56 = vld [vmem:[%s1438_s1 + $0x20] sm:$0xf]  ;;  %v1039_v57 = vld [vmem:[%s1438_s1 + $0x24] sm:$0xf0]  ;;  %v283_v60 = vsel %vm1239_vm1, %v277_v48, 0.0  ;;  %v863_v61 = vor.u32 %v1040_v46, %v860_v49  ;;  %v919_v0 = vor.u32 %v1054_v53, %v916_v54  ;;  %vm264_vm3 = vcmp.lt.s32.totalorder %v1176_v13, 1 }
  0x19   : > { %490 = vmatpush.bf16.msra.mxu3 %v927_v50  ;;  %v1038_v62 = vld [vmem:[%s1438_s1 + $0x24] sm:$0xf]  ;;  %v852_v63 = vld [vmem:[%s1438_s1 + $0x28] sm:$0xf0]  ;;  %v1052_v1 = vld [vmem:[%s1438_s1 + $0x94] sm:$0xf]  ;;  %v296_v3 = vpack.c.bf16 %v283_v60, %v276_v59  ;;  %v851_v4 = vor.u32 %v1039_v57, %v850_v56  ;;  %v265_v25 = vsel %vm264_vm3, %v262_v15, %v263_v14  ;;  %v266_v26 = vsel %vm264_vm3, %v263_v14, %v262_v15 }
  0x1a   : > { %447 = vmatpush.bf16.msra.mxu0 %v867_v39  ;;  %464 = vmatpush.bf16.msra.mxu1 %v907_v41  ;;  %v908_v2 = vld [vmem:[%s1438_s1 + $0x98] sm:$0xf0]  ;;  %v855_v5 = vor.u32 %v1038_v62, %v852_v63  ;;  %v842_v6 = vld [vmem:[%s1438_s1 + $0x10] sm:$0xf]  ;;  %v1037_v7 = vld [vmem:[%s1438_s1 + $0x14] sm:$0xf0] }
  0x1b   : > { %475 = vmatpush.bf16.msra.mxu2 %v871_v44  ;;  %v911_v8 = vor.u32 %v1052_v1, %v908_v2  ;;  %v1036_v9 = vld [vmem:[%s1438_s1 + $0x14] sm:$0xf]  ;;  %v844_v10 = vld [vmem:[%s1438_s1 + $0x18] sm:$0xf0]  ;;  %v843_v11 = vor.u32 %v1037_v7, %v842_v6  ;;  %v834_v16 = vld [vmem:[%s1438_s1] sm:$0xf] }
  0x1c   : > { %v847_v12 = vor.u32 %v1036_v9, %v844_v10  ;;  %v1035_v17 = vld [vmem:[%s1438_s1 + $0x4] sm:$0xf0]  ;;  %v1034_v18 = vld [vmem:[%s1438_s1 + $0x4] sm:$0xf]  ;;  %v836_v20 = vld [vmem:[%s1438_s1 + $0x8] sm:$0xf0] }
  0x1d   : > { %491 = vmatpush.bf16.msra.mxu3 %v919_v0  ;;  %v835_v19 = vor.u32 %v1035_v17, %v834_v16  ;;  %v1050_v21 = vld [vmem:[%s1438_s1 + $0x84] sm:$0xf]  ;;  %v900_v22 = vld [vmem:[%s1438_s1 + $0x88] sm:$0xf0]  ;;  %v839_v23 = vor.u32 %v1034_v18, %v836_v20  ;;  %v1073_v27 = vld [vmem:[%s1439_s2 + $0x78] sm:$0xff]  ;;  %v238_v34 = vand.u32 15, %v1176_v13 }
  0x1e   : > { %448 = vmatpush.bf16.msra.mxu0 %v859_v55  ;;  %465 = vmatpush.bf16.msra.mxu1 %v899_v58  ;;  %v903_v24 = vor.u32 %v1050_v21, %v900_v22  ;;  %v1065_v28 = vld [vmem:[%s1439_s2 + $0x38] sm:$0xff]  ;;  %v1072_v30 = vld [vmem:[%s1439_s2 + $0x70] sm:$0xff]  ;;  %v1071_v33 = vld [vmem:[%s1439_s2 + $0x68] sm:$0xff]  ;;  %vm1108_vm5 = vmmov 1  }
  0x1f   : > { %476 = vmatpush.bf16.msra.mxu2 %v863_v61  ;;  %v1081_v29 = vld [vmem:[%s1439_s2 + $0xb8] sm:$0xff]  ;;  %v1064_v31 = vld [vmem:[%s1439_s2 + $0x30] sm:$0xff]  ;;  %v1063_v35 = vld [vmem:[%s1439_s2 + $0x28] sm:$0xff]  ;;  %vm1361_vm4 = vcmp.ne.s32.totalorder %v238_v34, 0 }
  0x20   : > { %v1080_v32 = vld [vmem:[%s1439_s2 + $0xb0] sm:$0xff]  ;;  %v1079_v36 = vld [vmem:[%s1439_s2 + $0xa8] sm:$0xff]  ;;  %v1070_v37 = vld [vmem:[%s1439_s2 + $0x60] sm:$0xff]  ;;  %v271_v40 = vsel %vm1361_vm4, %v266_v26, 0.0 }
  0x21   : > { %928 = vmatmul.msk.bf16.vlgmr.msra.gmra.mxu1 %vm292_vm2, %v296_v3  ;;  %492 = vmatpush.bf16.msra.mxu3 %v911_v8  ;;  %v1062_v47 = vld [vmem:[%s1439_s2 + $0x20] sm:$0xff]  ;;  %v1069_v49 = vld [vmem:[%s1439_s2 + $0x58] sm:$0xff]  ;;  %v1068_v52 = vld [vmem:[%s1439_s2 + $0x50] sm:$0xff] }
  0x22   : > { %449 = vmatpush.bf16.msra.mxu0 %v851_v4  ;;  %715 = vmatpush.bf16.msrb.mxu1 %v1065_v28  ;;  %v1078_v48 = vld [vmem:[%s1439_s2 + $0xa0] sm:$0xff]  ;;  %v1061_v50 = vld [vmem:[%s1439_s2 + $0x18] sm:$0xff]  ;;  %v1060_v53 = vld [vmem:[%s1439_s2 + $0x10] sm:$0xff] }
  0x23   : > { %477 = vmatpush.bf16.msra.mxu2 %v855_v5  ;;  %v1077_v51 = vld [vmem:[%s1439_s2 + $0x98] sm:$0xff]  ;;  %v1076_v54 = vld [vmem:[%s1439_s2 + $0x90] sm:$0xff]  ;;  %v1067_v55 = vld [vmem:[%s1439_s2 + $0x48] sm:$0xff] }
  0x24   : > { %v1059_v56 = vld [vmem:[%s1439_s2 + $0x8] sm:$0xff]  ;;  %v1066_v58 = vld [vmem:[%s1439_s2 + $0x40] sm:$0xff]  ;;  %vm1026_vm6 = vmpackc.low %vm1108_vm5, %vm1361_vm4 }
  0x25   : > { %493 = vmatpush.bf16.msra.mxu3 %v903_v24  ;;  %v1075_v57 = vld [vmem:[%s1439_s2 + $0x88] sm:$0xff]  ;;  %v1058_v59 = vld [vmem:[%s1439_s2] sm:$0xff]  ;;  %vm1029_vm7 = vmpackc.low %vm1239_vm1, %vm1108_vm5 }
  0x26   : > { %450 = vmatpush.bf16.msra.mxu0 %v843_v11  ;;  %716 = vmatpush.bf16.msrb.mxu1 %v1064_v31  ;;  %v1074_v60 = vld [vmem:[%s1439_s2 + $0x80] sm:$0xff] }
  0x27   : > { %478 = vmatpush.bf16.msra.mxu2 %v847_v12  ;;  %v1097_v0 = vld [vmem:[%s1440_s3] ss:$0 sm:$0xff] }
  0x28   : > { %929 = vmatmul.msk.bf16.vlgmr.msra.gmra.mxu3 %vm292_vm2, %v296_v3  ;;  %v1098_v13 = vld [vmem:[%s1441_s4] ss:$0 sm:$0xff] }
  0x29   : > { %729 = vmatpush.bf16.msrb.mxu3 %v1073_v27 }
  0x2a   : > { %451 = vmatpush.bf16.msra.mxu0 %v835_v19  ;;  %717 = vmatpush.bf16.msrb.mxu1 %v1063_v35 }
  0x2b   : > { %479 = vmatpush.bf16.msra.mxu2 %v839_v23 }
  0x2d   : > { %730 = vmatpush.bf16.msrb.mxu3 %v1072_v30 }
  0x2e   : > { %743 = vmatpush.bf16.msrb.mxu0 %v1081_v29  ;;  %718 = vmatpush.bf16.msrb.mxu1 %v1062_v47 }
  0x31   : > { %731 = vmatpush.bf16.msrb.mxu3 %v1071_v33 }
  0x32   : > { %744 = vmatpush.bf16.msrb.mxu0 %v1080_v32  ;;  %719 = vmatpush.bf16.msrb.mxu1 %v1061_v50 }
  0x35   : > { %732 = vmatpush.bf16.msrb.mxu3 %v1070_v37 }
  0x36   : > { %745 = vmatpush.bf16.msrb.mxu0 %v1079_v36  ;;  %720 = vmatpush.bf16.msrb.mxu1 %v1060_v53 }
  0x39   : > { %733 = vmatpush.bf16.msrb.mxu3 %v1069_v49 }
  0x3a   : > { %746 = vmatpush.bf16.msrb.mxu0 %v1078_v48  ;;  %721 = vmatpush.bf16.msrb.mxu1 %v1059_v56 }
  0x3d   : > { %734 = vmatpush.bf16.msrb.mxu3 %v1068_v52 }
  0x3e   : > { %747 = vmatpush.bf16.msrb.mxu0 %v1077_v51  ;;  %722 = vmatpush.bf16.msrb.mxu1 %v1058_v59 }
  0x41   : > { %735 = vmatpush.bf16.msrb.mxu3 %v1067_v55 }
  0x42   : > { %748 = vmatpush.bf16.msrb.mxu0 %v1076_v54 }
  0x45   : > { %736 = vmatpush.bf16.msrb.mxu3 %v1066_v58 }
  0x46   : > { %749 = vmatpush.bf16.msrb.mxu0 %v1075_v57 }
  0x4a   : > { %750 = vmatpush.bf16.msrb.mxu0 %v1074_v60 }
  0x86   : > { %v1094_v39 = vpop.permute.xlu0 %1093 }
  0x87   : > { %v1096_v41 = vunpack.i.h.bf16 %v1094_v39  ;;  %v1095_v42 = vunpack.i.l.bf16 %v1094_v39 }
  0x89   : > { %v293_v44 = vsel %vm292_vm2, %v271_v40, %v1095_v42  ;;  %v294_v45 = vsel %vm292_vm2, %v265_v25, %v1096_v41 }
  0x8a   : > { %v295_v46 = vpack.c.bf16 %v294_v45, %v293_v44 }
  0x8c   : > { %452 = vmatmul.bf16.vlgmr.msra.gmra.mxu0 %v295_v46  ;;  %480 = vmatmul.bf16.vlgmr.msra.gmra.mxu2 %v295_v46 }
  0x9e   : > { %v467_v61 = vpop.f32.mrf.mxu1 }
  0xa6   : > { %v469_v2 = vpop.f32.mrf.mxu1 }
  0xab   : > { %v495_v20 = vpop.f32.mrf.mxu3 }
  0xb3   : > { %v497_v22 = vpop.f32.mrf.mxu3 }
 0x109   : > { %v453_v62 = vpop.f32.mrf.mxu0 }
 0x10a   : > { %v468_v63 = vadd.f32 %v467_v61, %v453_v62 }
 0x10c   : > { %v504_v1 = vadd.f32 %v1097_v0, %v468_v63 }
 0x10e   : > { %v506_v5 = vmax.f32 %v504_v1, 0.0 }
 0x10f   : > { %v481_v21 = vpop.f32.mrf.mxu2 }
 0x110   : > { %v508_v8 = vrot.slane %v506_v5, 7  ;;  %v514_v9 = vrot.slane %v506_v5, 1  ;;  %v496_v23 = vadd.f32 %v495_v20, %v481_v21 }
 0x111   : > { %v455_v3 = vpop.f32.mrf.mxu0 }
 0x112   : > { %v470_v4 = vadd.f32 %v469_v2, %v455_v3 }
 0x114   : > { %v505_v6 = vadd.f32 %v1097_v0, %v470_v4 }
 0x116   : > { %v507_v7 = vmax.f32 %v505_v6, 0.0 }
 0x117   : > { %v483_v28 = vpop.f32.mrf.mxu2 }
 0x118   : > { %v509_v10 = vrot.slane %v507_v7, 7  ;;  %v515_v11 = vrot.slane %v507_v7, 1  ;;  %v521_v12 = vpack.c.bf16 %v507_v7, %v506_v5  ;;  %v498_v30 = vadd.f32 %v497_v22, %v483_v28 }
 0x11a   : > { %737 = vmatmul.bf16.vlgmr.msrb.gmra.mxu3 %v521_v12  ;;  %v510_v14 = vsel %vm264_vm3, %v508_v8, %v509_v10  ;;  %v511_v15 = vsel %vm264_vm3, %v509_v10, %v508_v8  ;;  %v516_v16 = vsel %vm275_vm0, %v514_v9, %v515_v11  ;;  %v517_v17 = vsel %vm275_vm0, %v515_v11, %v514_v9 }
 0x11b   : > { %v1027_v18 = vpack.c.bf16 %v510_v14, %v511_v15  ;;  %v1030_v19 = vpack.c.bf16 %v517_v17, %v516_v16 }
 0x11d   : > { %1028 = vmatmul.msk.bf16.vlgmr.msrb.gmra.mxu1 %vm1026_vm6, %v1027_v18  ;;  %1031 = vmatmul.msk.bf16.vlgmr.msrb.gmra.mxu0 %vm1029_vm7, %v1030_v19 }
 0x19a   : > { %v724_v24 = vpop.f32.mrf.mxu1  ;;  %v752_v26 = vpop.f32.mrf.mxu0 }
 0x19b   : > { %v725_v25 = vadd.f32 %v724_v24, %v496_v23 }
 0x19d   : > { %v738_v27 = vpop.f32.mrf.mxu3 }
 0x19e   : > { %v739_v29 = vadd.f32 %v738_v27, %v725_v25 }
 0x1a0   : > { %v753_v43 = vadd.f32 %v752_v26, %v739_v29 }
 0x1a2   : > { %v761_v31 = vadd.f32 %v1098_v13, %v753_v43  ;;  %v726_v32 = vpop.f32.mrf.mxu1  ;;  %v754_v37 = vpop.f32.mrf.mxu0 }
 0x1a3   : > { %v727_v33 = vadd.f32 %v726_v32, %v498_v30 }
 0x1a4   : > { %v763_v34 = vmax.f32 %v761_v31, 0.0 }
 0x1a5   : > { %v740_v35 = vpop.f32.mrf.mxu3 }
 0x1a6   : > { %765 = vst [vmem:[%s226_s19] sm:$0xff] %v763_v34  ;;  %v741_v36 = vadd.f32 %v740_v35, %v727_v33 }
 0x1a8   : > { %v755_v38 = vadd.f32 %v754_v37, %v741_v36 }
 0x1aa   : > { %v762_v39 = vadd.f32 %v1098_v13, %v755_v38 }
 0x1ac   : > { %v764_v40 = vmax.f32 %v762_v39, 0.0 }
 0x1ae   : > { %766 = vst [vmem:[%s226_s19 + $0x8] sm:$0xff] %v764_v40 }
 0x1af PF: > { %s15_s18 = sadd.s32 1, %s1105_s18  }
 0x1b0   : > { %p12_p4 = scmp.ge.s32.totalorder %s15_s18, 4  }
 0x1b2   :  { %14 = sbr.rel (!%p12_p4) target bundleno = 1 (0x1), region = 70 }

</bundles_post_ra>
